<compile_context>
chip_gen: v5e
topology: v5e:2x2
jax: 0.10.0
libtpu: 0.0.40
codegen_flags: <defaults>
</compile_context>

<pallas_src>
import jax
import jax.numpy as jnp
from jax.experimental import pallas as pl
from jax.experimental.pallas import tpu as pltpu


HIDDEN = 64


def _round_up(x, m):
    return ((x + m - 1) // m) * m


def _cdiv(a, b):
    return -(-a // b)


def _tensorcores_per_chip():
    """Best-effort query of TensorCores per chip (2 on v7x, 1 on v5e/v6e)."""
    try:
        info = pltpu.get_tpu_info()
        for name in ("num_cores", "core_count", "num_tensorcores",
                     "tensorcore_count", "cores_per_chip"):
            v = getattr(info, name, None)
            if isinstance(v, int) and v > 0:
                return v
    except Exception:
        pass
    try:
        v = getattr(jax.devices()[0], "num_cores", None)
        if isinstance(v, int) and v > 0:
            return v
    except Exception:
        pass
    return 1


def _mlp_kernel(x_ref, w1_ref, b1_ref, w2_ref, b2_ref, w3_ref, b3_ref, o_ref):
    # x_ref:  (TB, IN)   f32   streamed per grid step; cast to bf16 in-kernel
    # w*_ref: bf16 weights     grid-resident (constant index_maps)
    # b*_ref: f32 biases       grid-resident
    # o_ref:  (TB, OUT)  f32   unpadded narrow output (block last dim == array dim)
    x = x_ref[...].astype(w1_ref.dtype)   # free VPU cast; saves a wrapper HBM pass

    # Layer 1: bf16 MXU matmul, f32 accumulate; bias + ReLU in f32 on the VPU.
    h1 = jnp.dot(x, w1_ref[...], preferred_element_type=jnp.float32)
    h1 = jnp.maximum(h1 + b1_ref[...], 0.0)

    # Layer 2 (activations re-cast to bf16 only at the MXU input).
    h2 = jnp.dot(h1.astype(w2_ref.dtype), w2_ref[...],
                 preferred_element_type=jnp.float32)
    h2 = jnp.maximum(h2 + b2_ref[...], 0.0)

    # Layer 3: narrow output, f32 epilogue.
    out = jnp.dot(h2.astype(w3_ref.dtype), w3_ref[...],
                  preferred_element_type=jnp.float32)
    o_ref[...] = (out + b3_ref[...]).astype(o_ref.dtype)


def prepare_params(params, *, hidden_pad=128):
    """One-time parameter prep (call once, reuse every forward):
    cast weights to bf16, biases to f32, and zero-pad the hidden dimension to a
    multiple of 128 so h1/h2 are full-lane tiles. Zero padding is numerically
    exact (padded hidden units are always 0 after ReLU and contribute nothing)."""
    hidden = params["w1"].shape[1]
    hp = max(_round_up(hidden, 128), hidden_pad)
    dh = hp - hidden
    return {
        "w1": jnp.pad(params["w1"], ((0, 0), (0, dh))).astype(jnp.bfloat16),
        "b1": jnp.pad(params["b1"], ((0, 0), (0, dh))).astype(jnp.float32),
        "w2": jnp.pad(params["w2"], ((0, dh), (0, dh))).astype(jnp.bfloat16),
        "b2": jnp.pad(params["b2"], ((0, 0), (0, dh))).astype(jnp.float32),
        "w3": jnp.pad(params["w3"], ((0, dh), (0, 0))).astype(jnp.bfloat16),
        "b3": params["b3"].astype(jnp.float32),
    }


def drone_swarm_network_forward(x, prepared, *, block_batch=512,
                                min_grid_steps=None):
    """Forward pass of DroneSwarmNetwork via a single fused Pallas kernel.

    x:        (batch, input_size) float32
    prepared: output of prepare_params() -- bf16 weights in (in, out) layout,
              f32 biases, hidden padded to a multiple of 128.
    returns:  (batch, output_size) float32
    """
    w1, b1 = prepared["w1"], prepared["b1"]
    w2, b2 = prepared["w2"], prepared["b2"]
    w3, b3 = prepared["w3"], prepared["b3"]

    batch, in_size = x.shape
    hp = w1.shape[1]
    out_size = w3.shape[1]
    assert w1.shape[0] == in_size and w2.shape == (hp, hp) and w3.shape[0] == hp

    # ---- Batch tiling -------------------------------------------------------
    # Rows quantised to 8 sublanes; tiles capped at block_batch.  On multi-TC
    # chips (v7x) force >= 2 steps per core (when batch allows) so the
    # "parallel" batch axis shards across cores and each core still pipelines.
    if min_grid_steps is None:
        cores = _tensorcores_per_chip()
        min_grid_steps = 2 * cores if cores > 1 else 1

    pb0 = _round_up(batch, 8)
    steps = max(_cdiv(pb0, block_batch), 1)
    if min_grid_steps > 1 and pb0 >= min_grid_steps * 8:
        steps = max(steps, min_grid_steps)
    tb = _round_up(_cdiv(pb0, steps), 8)
    steps = _cdiv(pb0, tb)
    pb = tb * steps

    # Pad batch only when needed; keep f32 (bf16 cast happens inside the kernel).
    x_p = x.astype(jnp.float32)
    if pb != batch:
        x_p = jnp.pad(x_p, ((0, pb - batch), (0, 0)))

    flops = 2 * pb * (in_size * hp + hp * hp + hp * out_size)
    bytes_accessed = (x_p.size * 4
                      + (w1.size + w2.size + w3.size) * 2
                      + (b1.size + b2.size + b3.size) * 4
                      + pb * out_size * 4)

    out = pl.pallas_call(
        _mlp_kernel,
        out_shape=jax.ShapeDtypeStruct((pb, out_size), jnp.float32),
        grid=(steps,),
        in_specs=[
            pl.BlockSpec((tb, in_size), lambda i: (i, 0)),   # x tile (streamed, f32)
            pl.BlockSpec((in_size, hp), lambda i: (0, 0)),   # w1 (resident)
            pl.BlockSpec((1, hp), lambda i: (0, 0)),         # b1 (resident)
            pl.BlockSpec((hp, hp), lambda i: (0, 0)),        # w2 (resident)
            pl.BlockSpec((1, hp), lambda i: (0, 0)),         # b2 (resident)
            pl.BlockSpec((hp, out_size), lambda i: (0, 0)),  # w3 (resident)
            pl.BlockSpec((1, out_size), lambda i: (0, 0)),   # b3 (resident)
        ],
        out_specs=pl.BlockSpec((tb, out_size), lambda i: (i, 0)),
        compiler_params=pltpu.CompilerParams(
            dimension_semantics=("parallel",)),
        cost_estimate=pl.CostEstimate(
            flops=flops, transcendentals=0, bytes_accessed=bytes_accessed),
    )(x_p, w1, b1, w2, b2, w3, b3)

    return out[:batch] if pb != batch else out


def init_params(key, state_size, action_size, num_drones):
    """Deterministic init mimicking PyTorch's default Linear init
    (uniform(-1/sqrt(fan_in), 1/sqrt(fan_in))), with weights stored as (in, out)."""
    input_size = state_size * num_drones
    output_size = action_size * num_drones
    dims = [(input_size, HIDDEN), (HIDDEN, HIDDEN), (HIDDEN, output_size)]

    params = {}
    keys = jax.random.split(key, 2 * len(dims))
    for i, (fan_in, fan_out) in enumerate(dims):
        bound = 1.0 / jnp.sqrt(jnp.float32(fan_in))
        w = jax.random.uniform(keys[2 * i], (fan_in, fan_out),
                               minval=-bound, maxval=bound, dtype=jnp.float32)
        b = jax.random.uniform(keys[2 * i + 1], (1, fan_out),
                               minval=-bound, maxval=bound, dtype=jnp.float32)
        params[f"w{i + 1}"] = w
        params[f"b{i + 1}"] = b
    return params


def _reference_bf16(x, params):
    """Plain-JAX reference using the same bf16-in / f32-accumulate math."""
    w1 = params["w1"].astype(jnp.bfloat16)
    w2 = params["w2"].astype(jnp.bfloat16)
    w3 = params["w3"].astype(jnp.bfloat16)
    h = jnp.dot(x.astype(jnp.bfloat16), w1, preferred_element_type=jnp.float32)
    h = jnp.maximum(h + params["b1"], 0.0)
    h = jnp.dot(h.astype(jnp.bfloat16), w2, preferred_element_type=jnp.float32)
    h = jnp.maximum(h + params["b2"], 0.0)
    out = jnp.dot(h.astype(jnp.bfloat16), w3, preferred_element_type=jnp.float32)
    return out + params["b3"]


def _reference_f32(x, params):
    """Full-f32 reference (exact PyTorch Sequential semantics)."""
    h = jnp.maximum(x @ params["w1"] + params["b1"], 0.0)
    h = jnp.maximum(h @ params["w2"] + params["b2"], 0.0)
    return h @ params["w3"] + params["b3"]


if __name__ == "__main__":
    # 3 drones, per-drone state 8, per-drone action 4
    # -> input_size = 24, output_size = 12.
    state_size, action_size, num_drones = 8, 4, 3
    batch = 2

    key = jax.random.PRNGKey(0)
    pkey, xkey, xkey2 = jax.random.split(key, 3)

    params = init_params(pkey, state_size, action_size, num_drones)
    prepared = prepare_params(params)   # one-time bf16 cast + hidden padding

    # --- Small (toy) batch, single grid step ---
    x = jax.random.normal(xkey, (batch, state_size * num_drones), dtype=jnp.float32)
    out = jax.block_until_ready(drone_swarm_network_forward(x, prepared))
    assert out.shape == (batch, action_size * num_drones)
    assert jnp.allclose(out, _reference_bf16(x, params), atol=1e-3, rtol=1e-3)
    assert jnp.allclose(out, _reference_f32(x, params), atol=5e-2, rtol=5e-2)

    # --- Larger batch forcing a multi-step, batch-padded grid ---
    batch2 = 300
    x2 = jax.random.normal(xkey2, (batch2, state_size * num_drones), dtype=jnp.float32)
    out2 = jax.block_until_ready(
        drone_swarm_network_forward(x2, prepared, block_batch=128))
    assert out2.shape == (batch2, action_size * num_drones)
    assert jnp.allclose(out2, _reference_bf16(x2, params), atol=1e-3, rtol=1e-3)
    assert jnp.allclose(out2, _reference_f32(x2, params), atol=5e-2, rtol=5e-2)

    # --- Default (large-tile) path on the same data must agree ---
    out3 = jax.block_until_ready(drone_swarm_network_forward(x2, prepared))
    assert jnp.allclose(out3, out2, atol=1e-5, rtol=1e-5)

    print("KERNEL_OK")
</pallas_src>

<mosaic_0001>
module attributes {stable_mosaic.version = 11 : i64} {
  func.func @_mlp_kernel(%arg0: i32, %arg1: memref<8x24xf32, #tpu.memory_space<vmem>>, %arg2: memref<24x128xbf16, #tpu.memory_space<vmem>>, %arg3: memref<1x128xf32, #tpu.memory_space<vmem>>, %arg4: memref<128x128xbf16, #tpu.memory_space<vmem>>, %arg5: memref<1x128xf32, #tpu.memory_space<vmem>>, %arg6: memref<128x12xbf16, #tpu.memory_space<vmem>>, %arg7: memref<1x12xf32, #tpu.memory_space<vmem>>, %arg8: memref<8x12xf32, #tpu.memory_space<vmem>>) attributes {dimension_semantics = [#tpu.dimension_semantics<parallel>], iteration_bounds = array<i64: 1>, scalar_prefetch = 0 : i64, scratch_operands = 0 : i64, tpu.core_type = #tpu.core_type<tc>, window_params = [{transform_indices = @transform_0, window_bounds = array<i64: 8, 24>}, {pipeline_mode = #tpu.pipeline_mode<synchronous>, transform_indices = @transform_1, window_bounds = array<i64: 24, 128>}, {pipeline_mode = #tpu.pipeline_mode<synchronous>, transform_indices = @transform_2, window_bounds = array<i64: 1, 128>}, {pipeline_mode = #tpu.pipeline_mode<synchronous>, transform_indices = @transform_3, window_bounds = array<i64: 128, 128>}, {pipeline_mode = #tpu.pipeline_mode<synchronous>, transform_indices = @transform_4, window_bounds = array<i64: 1, 128>}, {pipeline_mode = #tpu.pipeline_mode<synchronous>, transform_indices = @transform_5, window_bounds = array<i64: 128, 12>}, {pipeline_mode = #tpu.pipeline_mode<synchronous>, transform_indices = @transform_6, window_bounds = array<i64: 1, 12>}, {transform_indices = @transform_7, window_bounds = array<i64: 8, 12>}]} {
    %c0 = arith.constant 0 : index
    %c0_0 = arith.constant 0 : index
    %0 = vector.load %arg1[%c0, %c0_0] : memref<8x24xf32, #tpu.memory_space<vmem>>, vector<8x24xf32>
    %1 = arith.truncf %0 : vector<8x24xf32> to vector<8x24xbf16>
    %c0_1 = arith.constant 0 : index
    %c0_2 = arith.constant 0 : index
    %2 = vector.load %arg2[%c0_1, %c0_2] : memref<24x128xbf16, #tpu.memory_space<vmem>>, vector<24x128xbf16>
    %cst = arith.constant dense<0.000000e+00> : vector<8x128xf32>
    %3 = tpu.matmul %1, %2, %cst {dimension_numbers = #tpu.dot_dimension_numbers<[1], [0], [0], [1], [0, 0, 1, 1], [], []>} : vector<8x24xbf16>, vector<24x128xbf16>, vector<8x128xf32> -> vector<8x128xf32>
    %c0_3 = arith.constant 0 : index
    %c0_4 = arith.constant 0 : index
    %4 = vector.load %arg3[%c0_3, %c0_4] : memref<1x128xf32, #tpu.memory_space<vmem>>, vector<1x128xf32>
    %5 = vector.broadcast %4 : vector<1x128xf32> to vector<8x128xf32>
    %6 = arith.addf %3, %5 : vector<8x128xf32>
    %cst_5 = arith.constant 0.000000e+00 : f32
    %7 = vector.broadcast %cst_5 : f32 to vector<8x128xf32>
    %8 = arith.maximumf %6, %7 : vector<8x128xf32>
    %9 = arith.truncf %8 : vector<8x128xf32> to vector<8x128xbf16>
    %c0_6 = arith.constant 0 : index
    %c0_7 = arith.constant 0 : index
    %10 = vector.load %arg4[%c0_6, %c0_7] : memref<128x128xbf16, #tpu.memory_space<vmem>>, vector<128x128xbf16>
    %cst_8 = arith.constant dense<0.000000e+00> : vector<8x128xf32>
    %11 = tpu.matmul %9, %10, %cst_8 {dimension_numbers = #tpu.dot_dimension_numbers<[1], [0], [0], [1], [0, 0, 1, 1], [], []>} : vector<8x128xbf16>, vector<128x128xbf16>, vector<8x128xf32> -> vector<8x128xf32>
    %c0_9 = arith.constant 0 : index
    %c0_10 = arith.constant 0 : index
    %12 = vector.load %arg5[%c0_9, %c0_10] : memref<1x128xf32, #tpu.memory_space<vmem>>, vector<1x128xf32>
    %13 = vector.broadcast %12 : vector<1x128xf32> to vector<8x128xf32>
    %14 = arith.addf %11, %13 : vector<8x128xf32>
    %cst_11 = arith.constant 0.000000e+00 : f32
    %15 = vector.broadcast %cst_11 : f32 to vector<8x128xf32>
    %16 = arith.maximumf %14, %15 : vector<8x128xf32>
    %17 = arith.truncf %16 : vector<8x128xf32> to vector<8x128xbf16>
    %c0_12 = arith.constant 0 : index
    %c0_13 = arith.constant 0 : index
    %18 = vector.load %arg6[%c0_12, %c0_13] : memref<128x12xbf16, #tpu.memory_space<vmem>>, vector<128x12xbf16>
    %cst_14 = arith.constant dense<0.000000e+00> : vector<8x12xf32>
    %19 = tpu.matmul %17, %18, %cst_14 {dimension_numbers = #tpu.dot_dimension_numbers<[1], [0], [0], [1], [0, 0, 1, 1], [], []>} : vector<8x128xbf16>, vector<128x12xbf16>, vector<8x12xf32> -> vector<8x12xf32>
    %c0_15 = arith.constant 0 : index
    %c0_16 = arith.constant 0 : index
    %20 = vector.load %arg7[%c0_15, %c0_16] : memref<1x12xf32, #tpu.memory_space<vmem>>, vector<1x12xf32>
    %21 = vector.broadcast %20 : vector<1x12xf32> to vector<8x12xf32>
    %22 = arith.addf %19, %21 : vector<8x12xf32>
    %c0_17 = arith.constant 0 : index
    %c0_18 = arith.constant 0 : index
    %23 = vector.load %arg8[%c0_17, %c0_18] : memref<8x12xf32, #tpu.memory_space<vmem>>, vector<8x12xf32>
    tpu.vector_store %arg8[%c0_17, %c0_18], %22 {strides = array<i32>} : memref<8x12xf32, #tpu.memory_space<vmem>>, vector<8x12xf32>,
    return
  }
  func.func @transform_0(%arg0: i32) -> (i32, i32) {
    %c0_i32 = arith.constant 0 : i32
    %c0_i32_0 = arith.constant 0 : i32
    return %arg0, %c0_i32 : i32, i32
  }
  func.func @transform_1(%arg0: i32) -> (i32, i32) {
    %c0_i32 = arith.constant 0 : i32
    %c0_i32_0 = arith.constant 0 : i32
    %c0_i32_1 = arith.constant 0 : i32
    return %c0_i32, %c0_i32_0 : i32, i32
  }
  func.func @transform_2(%arg0: i32) -> (i32, i32) {
    %c0_i32 = arith.constant 0 : i32
    %c0_i32_0 = arith.constant 0 : i32
    %c0_i32_1 = arith.constant 0 : i32
    return %c0_i32, %c0_i32_0 : i32, i32
  }
  func.func @transform_3(%arg0: i32) -> (i32, i32) {
    %c0_i32 = arith.constant 0 : i32
    %c0_i32_0 = arith.constant 0 : i32
    %c0_i32_1 = arith.constant 0 : i32
    return %c0_i32, %c0_i32_0 : i32, i32
  }
  func.func @transform_4(%arg0: i32) -> (i32, i32) {
    %c0_i32 = arith.constant 0 : i32
    %c0_i32_0 = arith.constant 0 : i32
    %c0_i32_1 = arith.constant 0 : i32
    return %c0_i32, %c0_i32_0 : i32, i32
  }
  func.func @transform_5(%arg0: i32) -> (i32, i32) {
    %c0_i32 = arith.constant 0 : i32
    %c0_i32_0 = arith.constant 0 : i32
    %c0_i32_1 = arith.constant 0 : i32
    return %c0_i32, %c0_i32_0 : i32, i32
  }
  func.func @transform_6(%arg0: i32) -> (i32, i32) {
    %c0_i32 = arith.constant 0 : i32
    %c0_i32_0 = arith.constant 0 : i32
    %c0_i32_1 = arith.constant 0 : i32
    return %c0_i32, %c0_i32_0 : i32, i32
  }
  func.func @transform_7(%arg0: i32) -> (i32, i32) {
    %c0_i32 = arith.constant 0 : i32
    %c0_i32_0 = arith.constant 0 : i32
    return %arg0, %c0_i32 : i32, i32
  }
}

</mosaic_0001>

<bundles_post_ra>
// kernel: tpu_custom_call.1
= control target key start
LH: loop header
LB: loop body
LE: loop exit
PB: predicated region body
PF: predicated region fallthrough
CT: control target
= control target key end

     0   :  { %12 = vsyncpa [#allocation3], 0  ;;  %s523_s0 = inlined_call_operand.vmem [shape: f32[8,24], index: 0, kind: input, shape index: {}]   ;;  %s524_s1 = inlined_call_operand.hbm [shape: bf16[24,128], index: 1, kind: input, shape index: {}]   ;;  %s525_s2 = inlined_call_operand.vmem [shape: f32[1,128], index: 2, kind: input, shape index: {}]   ;;  %s526_s3 = inlined_call_operand.vmem [shape: bf16[128,128], index: 3, kind: input, shape index: {}]   ;;  %s527_s4 = inlined_call_operand.vmem [shape: f32[1,128], index: 4, kind: input, shape index: {}]   ;;  %s528_s5 = inlined_call_operand.vmem [shape: bf16[128,12], index: 5, kind: input, shape index: {}]   ;;  %s529_s6 = inlined_call_operand.vmem [shape: f32[1,12], index: 6, kind: input, shape index: {}]   ;;  %s530_s7 = inlined_call_operand.hbm [shape: f32[8,12], index: 7, kind: output, shape index: {}]  }
   0x1   :  { %13 = vsyncpa [#allocation4], 0  ;;  %s20_s26 = sshll.u32 %s524_s1, 4  ;;  %s413_s27 = smov [#allocation2]   ;;  %s21_s26 = int_to_ptr.hbm [resolvable:$true] %s20_s26 }
   0x2   :  { %s22_s28 = sshll.u32 %s413_s27, 4  ;;  %s414_s29 = smov 64   ;;  %s23_s28 = int_to_ptr.vmem [resolvable:$true] %s22_s28 }
   0x3   :  { %s415_s30 = smov 4  }
   0x4   :  { %28 = dma.hbm_to_vmem [thread:$0]  %s21_s26, 192, %s23_s28, [#allocation3], %s414_s29, %s414_s29, %s415_s30  }
   0x5   :  { %409 = dma.done.wait [#allocation3], 192  }
   0x6   :  { %410 = vsyncadd [#allocation3], 4294967104  ;;  %v48_v0 = vld [vmem:[#allocation2 + $0x8] sm:$0xf]  ;;  %v345_v2 = vld [vmem:[%s526_s3 + $0x38] sm:$0xff]  ;;  %vm66_vm0 = vcmask 1043456  }
   0x7   :  { %v58_v1 = vunpack.c.l.b16 %v48_v0  ;;  %153 = vmatpush.bf16.msra.mxu1 %v345_v2  ;;  %v344_v4 = vld [vmem:[%s526_s3 + $0x30] sm:$0xff]  ;;  %v337_v6 = vld [vmem:[#allocation2] sm:$0xff]  ;;  %v343_v8 = vld [vmem:[%s526_s3 + $0x28] sm:$0xff]  ;;  %vm62_vm1 = vcmask 195584   ;;  %s416_s19 = smov [#allocation5]   ;;  %vm249_vm2 = vcmask 97280  }
   0x8   :  { %v44_v7 = vld [vmem:[%s523_s0] sm:$0xff]  ;;  %v341_v11 = vld [vmem:[%s526_s3 + $0x18] sm:$0xff]  ;;  %v340_v12 = vld [vmem:[%s526_s3 + $0x10] sm:$0xff]  ;;  %s256_s20 = sshll.u32 %s416_s19, 4  ;;  %s257_s20 = int_to_ptr.vmem [resolvable:$true] %s256_s20 }
   0x9   :  { %v60_v3 = vpack.c.b16 %v58_v1, %v58_v1  ;;  %v45_v9 = vpack.c.bf16 %v44_v7, %v44_v7  ;;  %v342_v10 = vld [vmem:[%s526_s3 + $0x20] sm:$0xff]  ;;  %v339_v13 = vld [vmem:[%s526_s3 + $0x8] sm:$0xff]  ;;  %v353_v15 = vld [vmem:[%s528_s5 + $0x38] sm:$0xff] }
   0xa   :  { %v338_v14 = vld [vmem:[%s526_s3] sm:$0xff]  ;;  %236 = vmatpush.bf16.msra.mxu2 %v353_v15  ;;  %v352_v16 = vld [vmem:[%s528_s5 + $0x30] sm:$0xff]  ;;  %v351_v17 = vld [vmem:[%s528_s5 + $0x28] sm:$0xff] }
   0xb   :  { %v68_v5 = vsel %vm66_vm0, %v60_v3, 0  ;;  %154 = vmatpush.bf16.msra.mxu1 %v344_v4  ;;  %v350_v18 = vld [vmem:[%s528_s5 + $0x20] sm:$0xff]  ;;  %v349_v19 = vld [vmem:[%s528_s5 + $0x18] sm:$0xff]  ;;  %v348_v20 = vld [vmem:[%s528_s5 + $0x10] sm:$0xff] }
   0xc   :  { %76 = vmatpush.bf16.msra.mxu0 %v68_v5  ;;  %v358_v21 = vld [vmem:[%s525_s2] ss:$0 sm:$0xff]  ;;  %v347_v27 = vld [vmem:[%s528_s5 + $0x8] sm:$0xff] }
   0xd   :  { %v346_v28 = vld [vmem:[%s528_s5] sm:$0xff]  ;;  %s258_s5 = sshll.u32 %s530_s7, 4  ;;  %s259_s5 = int_to_ptr.hbm [resolvable:$true] %s258_s5 }
   0xe   :  { %237 = vmatpush.bf16.msra.mxu2 %v352_v16  ;;  %v359_v29 = vld [vmem:[%s527_s4] ss:$0 sm:$0xff] }
   0xf   :  { %155 = vmatpush.bf16.msra.mxu1 %v343_v8  ;;  %v360_v35 = vld [vmem:[%s529_s6] ss:$0 sm:$0xff] }
  0x10   :  { %77 = vmatpush.bf16.msra.mxu0 %v337_v6 }
  0x12   :  { %238 = vmatpush.bf16.msra.mxu2 %v351_v17 }
  0x13   :  { %272 = vmatmul.msk.bf16.vlgmr.msra.gmra.mxu0 %vm62_vm1, %v45_v9  ;;  %156 = vmatpush.bf16.msra.mxu1 %v342_v10 }
  0x16   :  { %239 = vmatpush.bf16.msra.mxu2 %v350_v18 }
  0x17   :  { %157 = vmatpush.bf16.msra.mxu1 %v341_v11 }
  0x1a   :  { %240 = vmatpush.bf16.msra.mxu2 %v349_v19 }
  0x1b   :  { %158 = vmatpush.bf16.msra.mxu1 %v340_v12 }
  0x1e   :  { %241 = vmatpush.bf16.msra.mxu2 %v348_v20 }
  0x1f   :  { %159 = vmatpush.bf16.msra.mxu1 %v339_v13 }
  0x22   :  { %242 = vmatpush.bf16.msra.mxu2 %v347_v27 }
  0x23   :  { %160 = vmatpush.bf16.msra.mxu1 %v338_v14 }
  0x26   :  { %243 = vmatpush.bf16.msra.mxu2 %v346_v28 }
  0x90   :  { %v79_v22 = vpop.f32.mrf.mxu0 }
  0x91   :  { %v80_v23 = vadd.f32 %v358_v21, %v79_v22 }
  0x93   :  { %v83_v24 = vmax.f32 %v80_v23, 0.0 }
  0x95   :  { %v84_v25 = vpack.c.bf16 %v83_v24, %v83_v24 }
  0x97   :  { %161 = vmatmul.bf16.vlgmr.msra.gmra.mxu1 %v84_v25 }
  0x98   :  { %v81_v26 = vpop.f32.mrf.mxu0 }
 0x114   :  { %v162_v30 = vpop.f32.mrf.mxu1 }
 0x115   :  { %v163_v31 = vadd.f32 %v359_v29, %v162_v30 }
 0x117   :  { %v166_v32 = vmax.f32 %v163_v31, 0.0 }
 0x119   :  { %v167_v33 = vpack.c.bf16 %v166_v32, %v166_v32 }
 0x11b   :  { %244 = vmatmul.bf16.vlgmr.msra.gmra.mxu2 %v167_v33 }
 0x11c   :  { %v164_v34 = vpop.f32.mrf.mxu1 }
 0x19e   :  { %v245_v36 = vpop.f32.mrf.mxu2 }
 0x19f   :  { %v246_v37 = vadd.f32 %v360_v35, %v245_v36 }
 0x1a1   :  { %250 = vst.msk [vmem:[#allocation5] sm:$0xff] %vm249_vm2, %v246_v37 }
 0x1a2   :  { %261 = dma.vmem_to_hbm [thread:$0]  %s257_s20, 128, %s259_s5, [#allocation4]  }
 0x1a6   :  { %v247_v38 = vpop.f32.mrf.mxu2 }
 0x1a7   :  { %411 = dma.done.wait [#allocation4], 128  }
 0x1a8   :  { %412 = vsyncadd [#allocation4], 4294967168 }
 0x1a9   :  { %266 = vsyncpa [#allocation3], 1 }
 0x1aa   :  { %267 = vsyncpa [#allocation4], 1 }

</bundles_post_ra>
